<compile_context>
chip_gen: v6e
topology: v6e:2x2x1
jax: 0.10.0
libtpu: 0.0.40
codegen_flags: <defaults>
</compile_context>

<pallas_src>
import functools

import jax
import jax.numpy as jnp
from jax.experimental import pallas as pl
from jax.experimental.pallas import tpu as pltpu

EPS = 1e-5  # nn.BatchNorm1d default

_VMEM_LIMIT = 48 * 1024 * 1024          # safe on v5e/v6e (128 MiB) and v7x (64 MiB)
_TILE_TARGET_BYTES = 4 * 1024 * 1024    # per-x-tile target, in the INPUT dtype
_TILE_CAP_BYTES = 8 * 1024 * 1024       # hard cap so 4 double-buffered copies fit v7x
_SMALL_PATH_MAX_F32_BYTES = 4 * 1024 * 1024  # single-pass path threshold (x as f32)


def _round_up(a, m):
    return ((a + m - 1) // m) * m


def _sublane(itemsize):
    # Minimum second-to-last block multiple: 8 for f32, 16 for bf16, 32 for int8/fp8.
    return max(8, 32 // max(itemsize, 1))


def _choose_tile_m(m, c, itemsize):
    sub = _sublane(itemsize)
    row_bytes = max(c * itemsize, 1)
    tm = _TILE_TARGET_BYTES // row_bytes
    tm = max(tm, 512)                               # stay above the HBM-roofline knee
    tm = min(tm, max(_TILE_CAP_BYTES // row_bytes, sub))  # keep VMEM footprint v7x-safe
    tm = min(tm, 2048)
    tm = max(_round_up(tm, sub), sub)
    m_cap = _round_up(m, sub)
    return min(tm, m_cap) if m_cap >= sub else sub


# --------------------------------------------------------------------------
# Single-pass fused kernel: x resident in VMEM, one read + one write of x.
# --------------------------------------------------------------------------
def _fused_kernel(x_ref, gamma_ref, beta_ref, alpha_ref, o_ref, *, inv_m):
    x = x_ref[...].astype(jnp.float32)                               # (M, C)
    mean = jnp.sum(x, axis=0, keepdims=True) * inv_m                 # (1, C)
    var = jnp.maximum(jnp.sum(x * x, axis=0, keepdims=True) * inv_m - mean * mean, 0.0)
    inv_std = jax.lax.rsqrt(var + EPS)
    gamma = gamma_ref[...].astype(jnp.float32)
    beta = beta_ref[...].astype(jnp.float32)
    alpha = alpha_ref[0]
    scale = gamma * inv_std + alpha
    bias = beta - gamma * mean * inv_std
    o_ref[...] = (x * scale + bias).astype(o_ref.dtype)


# --------------------------------------------------------------------------
# Streaming phase 1: per-channel partial sum / sum-of-squares.
# Grid = (n_split, tiles_per_split); the split axis is "parallel" so on v7x
# both TensorCores share the reduction; tail / duplicated tiles are masked.
# --------------------------------------------------------------------------
def _stats_kernel(x_ref, sum_ref, sumsq_ref, *, tm, m_total, tiles_per_split):
    s = pl.program_id(0)
    i = pl.program_id(1)

    @pl.when(i == 0)
    def _():
        sum_ref[...] = jnp.zeros_like(sum_ref)
        sumsq_ref[...] = jnp.zeros_like(sumsq_ref)

    x = x_ref[...].astype(jnp.float32)                               # (tm, C)
    # Mask rows past the true M (ragged last tile and clamped duplicate tiles).
    row = jax.lax.broadcasted_iota(jnp.int32, (tm, 1), 0)
    start = (s * tiles_per_split + i) * tm
    x = jnp.where(start + row < m_total, x, 0.0)

    sum_ref[...] += jnp.sum(x, axis=0)[None, None, :]                # (1, 1, C)
    sumsq_ref[...] += jnp.sum(x * x, axis=0)[None, None, :]


# --------------------------------------------------------------------------
# Streaming phase 2: y = x * scale + bias  (megacore-parallel, lane-dense).
# --------------------------------------------------------------------------
def _apply_kernel(x_ref, scale_ref, bias_ref, o_ref):
    x = x_ref[...].astype(jnp.float32)
    o_ref[...] = (x * scale_ref[...] + bias_ref[...]).astype(o_ref.dtype)


def repbn_forward(x, gamma, beta, alpha, *, tile_m=None, single_pass=None):
    """x: (B, N, C); gamma, beta: (C,); alpha: scalar  ->  (B, N, C)"""
    B, N, C = x.shape
    M = B * N
    x2d = x.reshape(M, C)                       # metadata only (transposes cancel)
    itemsize = jnp.dtype(x.dtype).itemsize
    sub = _sublane(itemsize)

    gamma2d = gamma.reshape(1, C).astype(jnp.float32)
    beta2d = beta.reshape(1, C).astype(jnp.float32)
    alpha1 = jnp.asarray(alpha, jnp.float32).reshape(1)

    if single_pass is None:
        single_pass = (M * C * 4 <= _SMALL_PATH_MAX_F32_BYTES) and tile_m is None

    # ---------------- small-input fast path: one fused pass -------------------
    if single_pass:
        out2d = pl.pallas_call(
            functools.partial(_fused_kernel, inv_m=1.0 / float(M)),
            out_shape=jax.ShapeDtypeStruct((M, C), x.dtype),
            grid=(1,),
            in_specs=[
                pl.BlockSpec((M, C), lambda i: (0, 0)),
                pl.BlockSpec((1, C), lambda i: (0, 0)),
                pl.BlockSpec((1, C), lambda i: (0, 0)),
                pl.BlockSpec(memory_space=pltpu.MemorySpace.SMEM),   # alpha scalar
            ],
            out_specs=pl.BlockSpec((M, C), lambda i: (0, 0)),
            compiler_params=pltpu.CompilerParams(
                dimension_semantics=("arbitrary",),
                vmem_limit_bytes=_VMEM_LIMIT),
        )(x2d, gamma2d, beta2d, alpha1)
        return out2d.reshape(B, N, C)

    # ---------------- streaming two-phase path --------------------------------
    tm = tile_m if tile_m is not None else _choose_tile_m(M, C, itemsize)
    tm = max(_round_up(tm, sub), sub)
    tm = min(tm, _round_up(M, sub))

    n_tiles = pl.cdiv(M, tm)
    n_split = 2 if n_tiles >= 4 else 1          # share phase-1 across v7x TensorCores
    tps = pl.cdiv(n_tiles, n_split)

    def x_stats_map(s, i):
        t = s * tps + i
        # Clamp the (at most one) duplicated tail tile; its rows are masked away.
        return (jnp.minimum(t, n_tiles - 1), 0)

    x_spec = pl.BlockSpec((tm, C), lambda i: (i, 0))
    ch_spec = pl.BlockSpec((1, C), lambda i: (0, 0))
    part_spec = pl.BlockSpec((1, 1, C), lambda s, i: (s, 0, 0))

    # ---- phase 1: per-channel partial sums -----------------------------------
    partial_sum, partial_sq = pl.pallas_call(
        functools.partial(_stats_kernel, tm=tm, m_total=M, tiles_per_split=tps),
        out_shape=(jax.ShapeDtypeStruct((n_split, 1, C), jnp.float32),
                   jax.ShapeDtypeStruct((n_split, 1, C), jnp.float32)),
        grid=(n_split, tps),
        in_specs=[pl.BlockSpec((tm, C), x_stats_map)],
        out_specs=(part_spec, part_spec),
        compiler_params=pltpu.CompilerParams(
            dimension_semantics=("parallel", "arbitrary"),
            vmem_limit_bytes=_VMEM_LIMIT),
    )(x2d)

    # ---- tiny (C,)-sized fold into fused scale/bias (plain JAX, negligible) ---
    mean = jnp.sum(partial_sum[:, 0, :], axis=0) / M
    var = jnp.maximum(jnp.sum(partial_sq[:, 0, :], axis=0) / M - mean * mean, 0.0)
    inv_std = jax.lax.rsqrt(var + EPS)
    g = gamma2d[0]
    b = beta2d[0]
    scale = (g * inv_std + alpha1[0]).reshape(1, C)
    bias = (b - g * mean * inv_std).reshape(1, C)

    # ---- phase 2: streaming normalize + residual ------------------------------
    out2d = pl.pallas_call(
        _apply_kernel,
        out_shape=jax.ShapeDtypeStruct((M, C), x.dtype),
        grid=(n_tiles,),
        in_specs=[x_spec, ch_spec, ch_spec],
        out_specs=x_spec,
        compiler_params=pltpu.CompilerParams(
            dimension_semantics=("parallel",),
            vmem_limit_bytes=_VMEM_LIMIT),
    )(x2d, scale, bias)

    return out2d.reshape(B, N, C)


def repbn_reference(x, gamma, beta, alpha):
    # Pure-JAX reference mirroring the PyTorch module (training-mode BN stats).
    xf = x.astype(jnp.float32)
    mean = jnp.mean(xf, axis=(0, 1), keepdims=True)
    var = jnp.mean((xf - mean) ** 2, axis=(0, 1), keepdims=True)
    bn = gamma.reshape(1, 1, -1) * (xf - mean) / jnp.sqrt(var + EPS) + beta.reshape(1, 1, -1)
    return (bn + jnp.asarray(alpha, jnp.float32) * xf).astype(x.dtype)


if __name__ == "__main__":
    def run_check(B, N, C, tol, **kwargs):
        x = jax.random.normal(jax.random.PRNGKey(0), (B, N, C), dtype=jnp.float32)
        gamma = 1.0 + 0.01 * jnp.arange(C, dtype=jnp.float32)
        beta = 0.1 - 0.005 * jnp.arange(C, dtype=jnp.float32)
        alpha = jnp.float32(1.0)
        out = repbn_forward(x, gamma, beta, alpha, **kwargs)
        jax.block_until_ready(out)
        ref = repbn_reference(x, gamma, beta, alpha)
        assert out.shape == x.shape and out.dtype == x.dtype
        assert jnp.allclose(out, ref, atol=tol, rtol=tol), f"mismatch {kwargs}"

    # 1) Small single-pass path (x resident in VMEM, one read + one write).
    run_check(2, 8, 32, 1e-4)
    # 2) Streaming two-phase path: ragged M edge, split reduction, partial blocks.
    run_check(2, 17, 32, 1e-4, tile_m=8, single_pass=False)

    print("KERNEL_OK")
</pallas_src>

<mosaic_0001>
module attributes {stable_mosaic.version = 11 : i64} {
  func.func @_fused_kernel(%arg0: i32, %arg1: memref<16x32xf32, #tpu.memory_space<vmem>>, %arg2: memref<1x32xf32, #tpu.memory_space<vmem>>, %arg3: memref<1x32xf32, #tpu.memory_space<vmem>>, %arg4: memref<1xf32, #tpu.memory_space<smem>>, %arg5: memref<16x32xf32, #tpu.memory_space<vmem>>) attributes {dimension_semantics = [#tpu.dimension_semantics<arbitrary>], iteration_bounds = array<i64: 1>, scalar_prefetch = 0 : i64, scratch_operands = 0 : i64, tpu.core_type = #tpu.core_type<tc>, window_params = [{pipeline_mode = #tpu.pipeline_mode<synchronous>, transform_indices = @transform_0, window_bounds = array<i64: 16, 32>}, {pipeline_mode = #tpu.pipeline_mode<synchronous>, transform_indices = @transform_1, window_bounds = array<i64: 1, 32>}, {pipeline_mode = #tpu.pipeline_mode<synchronous>, transform_indices = @transform_2, window_bounds = array<i64: 1, 32>}, {transform_indices = @transform_3, window_bounds = array<i64: 1>}, {pipeline_mode = #tpu.pipeline_mode<synchronous>, transform_indices = @transform_4, window_bounds = array<i64: 16, 32>}]} {
    %c0 = arith.constant 0 : index
    %c0_0 = arith.constant 0 : index
    %0 = vector.load %arg1[%c0, %c0_0] : memref<16x32xf32, #tpu.memory_space<vmem>>, vector<16x32xf32>
    %cst = arith.constant dense<0.000000e+00> : vector<32xf32>
    %1 = vector.multi_reduction <add>, %0, %cst [0] : vector<16x32xf32> to vector<32xf32>
    %2 = vector.shape_cast %1 : vector<32xf32> to vector<1x32xf32>
    %cst_1 = arith.constant 6.250000e-02 : f32
    %3 = vector.broadcast %cst_1 : f32 to vector<1x32xf32>
    %4 = arith.mulf %2, %3 : vector<1x32xf32>
    %5 = arith.mulf %0, %0 : vector<16x32xf32>
    %cst_2 = arith.constant dense<0.000000e+00> : vector<32xf32>
    %6 = vector.multi_reduction <add>, %5, %cst_2 [0] : vector<16x32xf32> to vector<32xf32>
    %7 = vector.shape_cast %6 : vector<32xf32> to vector<1x32xf32>
    %cst_3 = arith.constant 6.250000e-02 : f32
    %8 = vector.broadcast %cst_3 : f32 to vector<1x32xf32>
    %9 = arith.mulf %7, %8 : vector<1x32xf32>
    %10 = arith.mulf %4, %4 : vector<1x32xf32>
    %11 = arith.subf %9, %10 : vector<1x32xf32>
    %cst_4 = arith.constant 0.000000e+00 : f32
    %12 = vector.broadcast %cst_4 : f32 to vector<1x32xf32>
    %13 = arith.maximumf %11, %12 : vector<1x32xf32>
    %cst_5 = arith.constant 9.99999974E-6 : f32
    %14 = vector.broadcast %cst_5 : f32 to vector<1x32xf32>
    %15 = arith.addf %13, %14 : vector<1x32xf32>
    %16 = math.rsqrt %15 : vector<1x32xf32>
    %c0_6 = arith.constant 0 : index
    %c0_7 = arith.constant 0 : index
    %17 = vector.load %arg2[%c0_6, %c0_7] : memref<1x32xf32, #tpu.memory_space<vmem>>, vector<1x32xf32>
    %c0_8 = arith.constant 0 : index
    %c0_9 = arith.constant 0 : index
    %18 = vector.load %arg3[%c0_8, %c0_9] : memref<1x32xf32, #tpu.memory_space<vmem>>, vector<1x32xf32>
    %c0_10 = arith.constant 0 : index
    %19 = memref.load %arg4[%c0_10] : memref<1xf32, #tpu.memory_space<smem>>
    %20 = arith.mulf %17, %16 : vector<1x32xf32>
    %21 = vector.broadcast %19 : f32 to vector<1x32xf32>
    %22 = arith.addf %20, %21 : vector<1x32xf32>
    %23 = arith.mulf %17, %4 : vector<1x32xf32>
    %24 = arith.mulf %23, %16 : vector<1x32xf32>
    %25 = arith.subf %18, %24 : vector<1x32xf32>
    %26 = vector.broadcast %22 : vector<1x32xf32> to vector<16x32xf32>
    %27 = arith.mulf %0, %26 : vector<16x32xf32>
    %28 = vector.broadcast %25 : vector<1x32xf32> to vector<16x32xf32>
    %29 = arith.addf %27, %28 : vector<16x32xf32>
    %c0_11 = arith.constant 0 : index
    %c0_12 = arith.constant 0 : index
    %30 = vector.load %arg5[%c0_11, %c0_12] : memref<16x32xf32, #tpu.memory_space<vmem>>, vector<16x32xf32>
    tpu.vector_store %arg5[%c0_11, %c0_12], %29 {strides = array<i32>} : memref<16x32xf32, #tpu.memory_space<vmem>>, vector<16x32xf32>,
    return
  }
  func.func @transform_0(%arg0: i32) -> (i32, i32) {
    %c0_i32 = arith.constant 0 : i32
    %c0_i32_0 = arith.constant 0 : i32
    %c0_i32_1 = arith.constant 0 : i32
    return %c0_i32, %c0_i32_0 : i32, i32
  }
  func.func @transform_1(%arg0: i32) -> (i32, i32) {
    %c0_i32 = arith.constant 0 : i32
    %c0_i32_0 = arith.constant 0 : i32
    %c0_i32_1 = arith.constant 0 : i32
    return %c0_i32, %c0_i32_0 : i32, i32
  }
  func.func @transform_2(%arg0: i32) -> (i32, i32) {
    %c0_i32 = arith.constant 0 : i32
    %c0_i32_0 = arith.constant 0 : i32
    %c0_i32_1 = arith.constant 0 : i32
    return %c0_i32, %c0_i32_0 : i32, i32
  }
  func.func @transform_3(%arg0: i32) -> i32 {
    %c0_i32 = arith.constant 0 : i32
    %c0_i32_0 = arith.constant 0 : i32
    return %c0_i32 : i32
  }
  func.func @transform_4(%arg0: i32) -> (i32, i32) {
    %c0_i32 = arith.constant 0 : i32
    %c0_i32_0 = arith.constant 0 : i32
    %c0_i32_1 = arith.constant 0 : i32
    return %c0_i32, %c0_i32_0 : i32, i32
  }
}

</mosaic_0001>

<bundles_post_ra>
// kernel: tpu_custom_call.1
= control target key start
LH: loop header
LB: loop body
LE: loop exit
PB: predicated region body
PF: predicated region fallthrough
CT: control target
= control target key end

     0   :  { %10 = vsyncpa [#allocation4], 0  ;;  %s213_s0 = inlined_call_operand.hbm [shape: f32[16,32], index: 0, kind: input, shape index: {}]   ;;  %s214_s1 = inlined_call_operand.vmem [shape: f32[1,32], index: 1, kind: input, shape index: {}]   ;;  %s215_s2 = inlined_call_operand.vmem [shape: f32[1,32], index: 2, kind: input, shape index: {}]   ;;  %s216_s3 = inlined_call_operand.<no memory space> [shape: f32[1], index: 3, kind: input, shape index: {}]   ;;  %s217_s4 = inlined_call_operand.hbm [shape: f32[16,32], index: 4, kind: output, shape index: {}]  }
   0x1   :  { %11 = vsyncpa [#allocation5], 0  ;;  %s157_s15 = smov [#allocation3]  }
   0x2   :  { %s17_s16 = sshll.u32 %s157_s15, 4  ;;  %s18_s16 = int_to_ptr.vmem [resolvable:$true] %s17_s16 }
   0x3   :  { %s121_s17 = scalar_lea.vmem %s18_s16, 256  ;;  %p126_p1 = scmp.lt.s32.totalorder %s18_s16, %s18_s16 }
   0x4   :  { %p122_p0 = scmp.ne.s32.totalorder %s18_s16, %s121_s17  ;;  %p127_p2 = scmp.lt.s32.totalorder %s121_s17, %s121_s17 }
   0x6   :  { %p128_p3 = por %p127_p2, %p126_p1 }
   0x8   :  { %p129_p4 = pnand %p128_p3, %p122_p0 }
   0xa   :  { %132 = shalt.err (!%p129_p4)
}
   0xb   :  { %s158_s18 = smov 128   ;;  %s159_s19 = smov 8  }
   0xc   :  { %23 = dma.hbm_to_vmem [thread:$0]  %s213_s0, 256, %s18_s16, [#allocation4], %s158_s18, %s158_s18, %s159_s19  }
   0xd   :  { %153 = dma.done.wait [#allocation4], 256  }
   0xe   :  { %154 = vsyncadd [#allocation4], 4294967040  ;;  %vm35_vm0 = vcmask 261120   ;;  %v33_v0 = vld [vmem:[#allocation3] sm:$0xff]  ;;  %v34_v1 = vld [vmem:[#allocation3 + $0x8] sm:$0xff]  ;;  %v73_v28 = vlaneseq  ;;  %v67_v34 = vstv %s216_s3  ;;  %s160_s27 = smov [#allocation6]  }
   0xf   :  { %v36_v2 = vsel %vm35_vm0, %v33_v0, 0.0  ;;  %v37_v3 = vsel %vm35_vm0, %v34_v1, 0.0  ;;  %v46_v4 = vmul.f32 %v33_v0, %v33_v0  ;;  %v47_v5 = vmul.f32 %v34_v1, %v34_v1  ;;  %v63_v29 = vld [vmem:[%s214_s1] sm:$0x1]  ;;  %s95_s1 = sshll.u32 %s160_s27, 4  ;;  %s96_s1 = int_to_ptr.vmem [resolvable:$true] %s95_s1 }
  0x10   :  { %v38_v6 = vadd.f32 %v37_v3, %v36_v2  ;;  %v74_v31 = vshrl.u32 %v73_v28, 7  ;;  %v64_v33 = vld [vmem:[%s215_s2] sm:$0x1]  ;;  %s133_s2 = scalar_lea.vmem %s96_s1, 256  ;;  %p138_p6 = scmp.lt.s32.totalorder %s96_s1, %s96_s1 }
  0x11   :  { %v48_v7 = vsel %vm35_vm0, %v46_v4, 0.0  ;;  %v49_v8 = vsel %vm35_vm0, %v47_v5, 0.0  ;;  %p134_p5 = scmp.ne.s32.totalorder %s96_s1, %s133_s2  ;;  %p139_p7 = scmp.lt.s32.totalorder %s133_s2, %s133_s2 }
  0x12   :  { %v39_v9 = vrot.slane %v38_v6, 4  ;;  %v50_v10 = vadd.f32 %v49_v8, %v48_v7  ;;  %v75_v37 = vsub.s32 0, %v74_v31 }
  0x13   :  { %p140_p8 = por %p139_p7, %p138_p6 }
  0x14   :  { %v40_v11 = vadd.f32 %v39_v9, %v38_v6  ;;  %v51_v12 = vrot.slane %v50_v10, 4 }
  0x15   :  { %p141_p9 = pnand %p140_p8, %p134_p5 }
  0x16   :  { %v41_v13 = vrot.slane %v40_v11, 2  ;;  %v52_v14 = vadd.f32 %v51_v12, %v50_v10 }
  0x18   :  { %v42_v15 = vadd.f32 %v41_v13, %v40_v11  ;;  %v53_v16 = vrot.slane %v52_v14, 2 }
  0x1a   :  { %v43_v17 = vrot.slane %v42_v15, 1  ;;  %v54_v18 = vadd.f32 %v53_v16, %v52_v14 }
  0x1c   :  { %v44_v19 = vadd.f32 %v43_v17, %v42_v15  ;;  %v55_v20 = vrot.slane %v54_v18, 1 }
  0x1e   :  { %v45_v21 = vmul.f32 0.0625, %v44_v19  ;;  %v56_v22 = vadd.f32 %v55_v20, %v54_v18 }
  0x20   :  { %v57_v23 = vmul.f32 0.0625, %v56_v22  ;;  %v58_v24 = vmul.f32 %v45_v21, %v45_v21  ;;  %v69_v30 = vmul.f32 %v63_v29, %v45_v21 }
  0x22   :  { %v59_v25 = vsub.f32 %v57_v23, %v58_v24 }
  0x24   :  { %v60_v26 = vmax.f32 %v59_v25, 0.0 }
  0x26   :  { %v61_v27 = vadd.f32 1e-05, %v60_v26 }
  0x28   :  { %111 = vrsqrt.f32 %v61_v27 }
  0x35   :  { %v112_v32 = vpop.eup %111 }
  0x36   :  { %v66_v35 = vmul.f32 %v112_v32, %v63_v29  ;;  %v70_v36 = vmul.f32 %v112_v32, %v69_v30 }
  0x38   :  { %v68_v38 = vadd.f32 %v67_v34, %v66_v35  ;;  %v71_v39 = vsub.f32 %v64_v33, %v70_v36 }
  0x3a   :  { %v76_v40 = vrot.slane %v68_v38, %v75_v37  ;;  %v84_v41 = vrot.slane %v71_v39, %v75_v37 }
  0x3c   :  { %v78_v42 = vmul.f32 %v76_v40, %v33_v0  ;;  %v79_v43 = vmul.f32 %v76_v40, %v34_v1 }
  0x3e   :  { %v86_v44 = vadd.f32 %v84_v41, %v78_v42  ;;  %v87_v45 = vadd.f32 %v84_v41, %v79_v43 }
  0x40   :  { %88 = vst.msk [vmem:[#allocation6] sm:$0xff] %vm35_vm0, %v86_v44  ;;  %89 = vst.msk [vmem:[#allocation6 + $0x8] sm:$0xff] %vm35_vm0, %v87_v45 }
  0x41   :  { %144 = shalt.err (!%p141_p9)
}
  0x42   :  { %101 = dma.vmem_to_hbm [thread:$0]  %s96_s1, 256, %s217_s4, [#allocation5], %s158_s18, %s158_s18, %s159_s19  }
  0x43   :  { %155 = dma.done.wait [#allocation5], 256  }
  0x44   :  { %156 = vsyncadd [#allocation5], 4294967040 }
  0x45   :  { %105 = vsyncpa [#allocation4], 1 }
  0x46   :  { %106 = vsyncpa [#allocation5], 1 }

</bundles_post_ra>
